<compile_context>
chip_gen: v6e
topology: v6e:2x2x1
jax: 0.10.0
libtpu: 0.0.40
codegen_flags: <defaults>
</compile_context>

<pallas_src>
import functools

import jax
import jax.numpy as jnp
import numpy as np
from jax.experimental import pallas as pl
from jax.experimental.pallas import tpu as pltpu


def _cdiv(a, b):
    return (a + b - 1) // b


def _round_up(x, m):
    return ((x + m - 1) // m) * m


def _round_down(x, m):
    return (x // m) * m


# ----------------------------- Pallas kernel ------------------------------ #
def _focal_ce_partial_kernel(x_ref, t_ref, o_ref, *, n_valid, tile_n):
    """One grid step over a (tile_n, C) slab of logits.

    x_ref : (tile_n, C)    logits (any float dtype; accumulated in f32)
    t_ref : (tile_n, 1)    int32 target class per row
    o_ref : (1, 8, 128)    per-core resident partial-sum block (scalar broadcast)
    """
    core = pl.program_id(0)
    step = pl.program_id(1)
    steps_per_core = pl.num_programs(1)

    @pl.when(step == 0)
    def _init():
        o_ref[...] = jnp.zeros_like(o_ref)

    x = x_ref[...].astype(jnp.float32)                       # (tile_n, C)
    tgt = t_ref[...]                                         # (tile_n, 1) int32

    # Numerically stable per-row log-sum-exp (softmax denominator).
    m = jnp.max(x, axis=-1, keepdims=True)                   # (tile_n, 1)
    lse = m + jnp.log(jnp.sum(jnp.exp(x - m), axis=-1, keepdims=True))

    # Target logit via fused where(iota == target) reduction (no gather,
    # no int->float one-hot multiply).
    col = jax.lax.broadcasted_iota(jnp.int32, x.shape, 1)
    z_t = jnp.sum(jnp.where(col == tgt, x, 0.0), axis=-1, keepdims=True)

    nll = lse - z_t                                          # -log p(target) per row

    # Mask rows past the real batch (partial last block and clamped
    # fully-out-of-range blocks both land here with garbage rows).
    logical_block = core * steps_per_core + step
    row = jax.lax.broadcasted_iota(jnp.int32, (tile_n, 1), 0) + logical_block * tile_n
    nll = jnp.where(row < n_valid, nll, 0.0)

    o_ref[...] = o_ref[...] + jnp.sum(nll)


# ------------------------------- wrapper ----------------------------------- #
def focal_loss(logits, targets, gamma=0.0, eps=1e-7,
               target_block_bytes=2 << 20, num_parallel=2):
    """FocalLoss.forward(input=(N, C) logits, target=(N,) int labels) -> scalar.

    `eps` is kept for signature parity with the PyTorch module (unused in its
    forward as well).  `num_parallel=2` shards rows across both TensorCores on
    v7x; it is a harmless sequential split on single-core chips.
    """
    # TODO(synk): CrossEntropyLoss also accepts (N, C, d1, ...) inputs; only the
    # standard (N, C) classification case is implemented here.
    del eps
    N, C = logits.shape
    itemsize = jnp.dtype(logits.dtype).itemsize

    # Byte-budgeted row tile: multiple of 8, <= batch, and no larger than one
    # TensorCore's share of the rows (so both v7x cores get work).
    if N < 8:
        tile_n = N                                   # full-extent block is legal
    else:
        tile_n = max(8, _round_down(target_block_bytes // (C * itemsize), 8))
        per_core_cap = _round_up(_cdiv(N, num_parallel), 8)
        tile_n = max(8, min(tile_n, _round_down(N, 8), per_core_cap))

    nblocks = _cdiv(N, tile_n)
    steps_per_core = _cdiv(nblocks, num_parallel)

    def _block_idx(c, i):
        # Clamp blocks that fall entirely past the batch back onto a valid
        # block; their rows are masked in-kernel so they contribute 0.
        return jnp.minimum(c * steps_per_core + i, nblocks - 1)

    t = targets.astype(jnp.int32).reshape(N, 1)

    # Double-buffered VMEM footprint: logits block + lane-padded targets block.
    blk_bytes = tile_n * C * itemsize
    tgt_bytes = tile_n * 128 * 4
    vmem_need = 2 * (blk_bytes + tgt_bytes) + (2 << 20)
    vmem_limit = int(min(max(vmem_need, 8 << 20), 48 << 20))

    kernel = functools.partial(_focal_ce_partial_kernel, n_valid=N, tile_n=tile_n)

    partial = pl.pallas_call(
        kernel,
        grid=(num_parallel, steps_per_core),
        out_shape=jax.ShapeDtypeStruct((num_parallel, 8, 128), jnp.float32),
        in_specs=[
            pl.BlockSpec((tile_n, C), lambda c, i: (_block_idx(c, i), 0)),
            pl.BlockSpec((tile_n, 1), lambda c, i: (_block_idx(c, i), 0)),
        ],
        out_specs=pl.BlockSpec((1, 8, 128), lambda c, i: (c, 0, 0)),
        compiler_params=pltpu.CompilerParams(
            # outer axis: independent per-core partial sums -> parallel
            # inner axis: carries the running CE sum -> sequential
            dimension_semantics=("parallel", "arbitrary"),
            vmem_limit_bytes=vmem_limit,
        ),
    )(logits, t)

    # Tiny scalar epilogue: combine per-core partials, take the mean, apply
    # the focal transform (cheaper than a serializing in-kernel finalize).
    total = jnp.sum(partial[:, 0, 0])
    mean_ce = total / jnp.float32(N)                 # CrossEntropyLoss('mean')

    g = float(gamma)
    if g == 0.0:
        return mean_ce                               # (1-p)^0 == 1
    p = jnp.exp(-mean_ce)
    w = 1.0 - p
    if g == int(g) and 0 < int(g) <= 8:
        f = w
        for _ in range(int(g) - 1):
            f = f * w
    else:
        f = w ** g
    return f * mean_ce


# ----------------------------- reference (pure JAX) ------------------------ #
def _ref_focal(logits, targets, gamma):
    lp = jax.nn.log_softmax(logits.astype(jnp.float32), axis=-1)
    nll = -jnp.take_along_axis(lp, targets[:, None].astype(jnp.int32), axis=-1)[:, 0]
    ce = jnp.mean(nll)                               # CrossEntropyLoss (mean)
    p = jnp.exp(-ce)
    return (1.0 - p) ** gamma * ce


# ------------------------------- main -------------------------------------- #
if __name__ == "__main__":
    key = jax.random.PRNGKey(0)
    k_x, k_t, k_x2, k_t2, k_x3, k_t3 = jax.random.split(key, 6)

    # Small case: batch=8, classes=32 (single block, exercises the clamped
    # second-core block path).
    N, C = 8, 32
    logits = jax.random.normal(k_x, (N, C), jnp.float32)
    targets = jax.random.randint(k_t, (N,), 0, C, dtype=jnp.int32)
    for gamma in (0.0, 2.0):
        out = jax.block_until_ready(focal_loss(logits, targets, gamma=gamma))
        ref = jax.block_until_ready(_ref_focal(logits, targets, gamma))
        np.testing.assert_allclose(np.asarray(out), np.asarray(ref),
                                   rtol=1e-5, atol=1e-5)

    # Multi-block case: ragged batch (300) and non-multiple-of-128 classes
    # (200) -> exercises the row mask + per-core split with no padding.
    N2, C2 = 300, 200
    logits2 = jax.random.normal(k_x2, (N2, C2), jnp.float32)
    targets2 = jax.random.randint(k_t2, (N2,), 0, C2, dtype=jnp.int32)
    out2 = jax.block_until_ready(focal_loss(logits2, targets2, gamma=2.0))
    ref2 = jax.block_until_ready(_ref_focal(logits2, targets2, 2.0))
    np.testing.assert_allclose(np.asarray(out2), np.asarray(ref2),
                               rtol=1e-5, atol=1e-5)

    # Many inner grid steps per core (small block budget) + partial last block:
    # exercises the resident accumulator across the "arbitrary" axis.
    N3, C3 = 1000, 64
    logits3 = jax.random.normal(k_x3, (N3, C3), jnp.float32)
    targets3 = jax.random.randint(k_t3, (N3,), 0, C3, dtype=jnp.int32)
    out3 = jax.block_until_ready(
        focal_loss(logits3, targets3, gamma=2.0, target_block_bytes=16 << 10))
    ref3 = jax.block_until_ready(_ref_focal(logits3, targets3, 2.0))
    np.testing.assert_allclose(np.asarray(out3), np.asarray(ref3),
                               rtol=1e-5, atol=1e-5)

    # bf16 logits path (halves HBM bytes; accumulation stays f32 in-kernel).
    logits_bf = logits2.astype(jnp.bfloat16)
    out4 = jax.block_until_ready(focal_loss(logits_bf, targets2, gamma=2.0))
    ref4 = jax.block_until_ready(_ref_focal(logits_bf, targets2, 2.0))
    np.testing.assert_allclose(np.asarray(out4), np.asarray(ref4),
                               rtol=1e-3, atol=1e-3)

    print("KERNEL_OK")
</pallas_src>

<mosaic_0001>
module attributes {stable_mosaic.version = 11 : i64} {
  func.func @_focal_ce_partial_kernel(%arg0: i32, %arg1: i32, %arg2: memref<8x32xf32, #tpu.memory_space<vmem>>, %arg3: memref<8x1xi32, #tpu.memory_space<vmem>>, %arg4: memref<1x8x128xf32, #tpu.memory_space<vmem>>) attributes {dimension_semantics = [#tpu.dimension_semantics<parallel>, #tpu.dimension_semantics<arbitrary>], iteration_bounds = array<i64: 2, 1>, scalar_prefetch = 0 : i64, scratch_operands = 0 : i64, tpu.core_type = #tpu.core_type<tc>, window_params = [{transform_indices = @transform_0, window_bounds = array<i64: 8, 32>}, {transform_indices = @transform_1, window_bounds = array<i64: 8, 1>}, {transform_indices = @transform_2, window_bounds = array<i64: 1, 8, 128>}]} {
    %c0_i32 = arith.constant 0 : i32
    %0 = arith.cmpi eq, %arg1, %c0_i32 : i32
    %1 = arith.extui %0 : i1 to i32
    %c0_i32_0 = arith.constant 0 : i32
    %2 = arith.cmpi ne, %1, %c0_i32_0 : i32
    scf.if %2 {
      %cst_16 = arith.constant 0.000000e+00 : f32
      %40 = vector.broadcast %cst_16 : f32 to vector<1x8x128xf32>
      %c0_17 = arith.constant 0 : index
      %c0_18 = arith.constant 0 : index
      %c0_19 = arith.constant 0 : index
      %41 = vector.load %arg4[%c0_17, %c0_18, %c0_19] : memref<1x8x128xf32, #tpu.memory_space<vmem>>, vector<1x8x128xf32>
      tpu.vector_store %arg4[%c0_17, %c0_18, %c0_19], %40 {strides = array<i32>} : memref<1x8x128xf32, #tpu.memory_space<vmem>>, vector<1x8x128xf32>,
    } else {
    }
    %c0 = arith.constant 0 : index
    %c0_1 = arith.constant 0 : index
    %3 = vector.load %arg2[%c0, %c0_1] : memref<8x32xf32, #tpu.memory_space<vmem>>, vector<8x32xf32>
    %c0_2 = arith.constant 0 : index
    %c0_3 = arith.constant 0 : index
    %4 = vector.load %arg3[%c0_2, %c0_3] : memref<8x1xi32, #tpu.memory_space<vmem>>, vector<8x1xi32>
    %cst = arith.constant dense<0xFF800000> : vector<8xf32>
    %5 = vector.multi_reduction <maximumf>, %3, %cst [1] : vector<8x32xf32> to vector<8xf32>
    %6 = vector.shape_cast %5 : vector<8xf32> to vector<8x1xf32>
    %7 = vector.broadcast %6 : vector<8x1xf32> to vector<8x32xf32>
    %8 = arith.subf %3, %7 : vector<8x32xf32>
    %9 = math.exp %8 : vector<8x32xf32>
    %cst_4 = arith.constant dense<0.000000e+00> : vector<8xf32>
    %10 = vector.multi_reduction <add>, %9, %cst_4 [1] : vector<8x32xf32> to vector<8xf32>
    %11 = vector.shape_cast %10 : vector<8xf32> to vector<8x1xf32>
    %12 = math.log %11 : vector<8x1xf32>
    %13 = arith.addf %6, %12 : vector<8x1xf32>
    %14 = tpu.iota {dimensions = array<i32: 1>} : vector<8x32xi32>
    %15 = vector.broadcast %4 : vector<8x1xi32> to vector<8x32xi32>
    %16 = arith.cmpi eq, %14, %15 : vector<8x32xi32>
    %cst_5 = arith.constant 0.000000e+00 : f32
    %17 = vector.broadcast %cst_5 : f32 to vector<8x32xf32>
    %18 = arith.select %16, %3, %17 : vector<8x32xi1>, vector<8x32xf32>
    %cst_6 = arith.constant dense<0.000000e+00> : vector<8xf32>
    %19 = vector.multi_reduction <add>, %18, %cst_6 [1] : vector<8x32xf32> to vector<8xf32>
    %20 = vector.shape_cast %19 : vector<8xf32> to vector<8x1xf32>
    %21 = arith.subf %13, %20 : vector<8x1xf32>
    %c1_i32 = arith.constant 1 : i32
    %22 = arith.muli %arg0, %c1_i32 : i32
    %23 = arith.addi %22, %arg1 : i32
    %24 = tpu.iota {dimensions = array<i32: 0>} : vector<8x1xi32>
    %c8_i32 = arith.constant 8 : i32
    %25 = arith.muli %23, %c8_i32 : i32
    %26 = vector.broadcast %25 : i32 to vector<8x1xi32>
    %27 = arith.addi %24, %26 : vector<8x1xi32>
    %c8_i32_7 = arith.constant 8 : i32
    %28 = vector.broadcast %c8_i32_7 : i32 to vector<8x1xi32>
    %29 = arith.cmpi slt, %27, %28 : vector<8x1xi32>
    %cst_8 = arith.constant 0.000000e+00 : f32
    %30 = vector.broadcast %cst_8 : f32 to vector<8x1xf32>
    %31 = arith.select %29, %21, %30 : vector<8x1xi1>, vector<8x1xf32>
    %c0_9 = arith.constant 0 : index
    %c0_10 = arith.constant 0 : index
    %c0_11 = arith.constant 0 : index
    %32 = vector.load %arg4[%c0_9, %c0_10, %c0_11] : memref<1x8x128xf32, #tpu.memory_space<vmem>>, vector<1x8x128xf32>
    %33 = vector.shape_cast %31 : vector<8x1xf32> to vector<1x8x1xf32>
    %cst_12 = arith.constant dense<0.000000e+00> : vector<1xf32>
    %34 = vector.multi_reduction <add>, %33, %cst_12 [1, 2] : vector<1x8x1xf32> to vector<1xf32>
    %35 = vector.shape_cast %34 : vector<1xf32> to vector<1x1x1xf32>
    %36 = vector.extract %35[0, 0, 0] : f32 from vector<1x1x1xf32>
    %37 = vector.broadcast %36 : f32 to vector<1x8x128xf32>
    %38 = arith.addf %32, %37 : vector<1x8x128xf32>
    %c0_13 = arith.constant 0 : index
    %c0_14 = arith.constant 0 : index
    %c0_15 = arith.constant 0 : index
    %39 = vector.load %arg4[%c0_13, %c0_14, %c0_15] : memref<1x8x128xf32, #tpu.memory_space<vmem>>, vector<1x8x128xf32>
    tpu.vector_store %arg4[%c0_13, %c0_14, %c0_15], %38 {strides = array<i32>} : memref<1x8x128xf32, #tpu.memory_space<vmem>>, vector<1x8x128xf32>,
    return
  }
  func.func @transform_0(%arg0: i32, %arg1: i32) -> (i32, i32) {
    %c1_i32 = arith.constant 1 : i32
    %0 = arith.muli %arg0, %c1_i32 : i32
    %1 = arith.addi %0, %arg1 : i32
    %c0_i32 = arith.constant 0 : i32
    %2 = arith.minsi %1, %c0_i32 : i32
    %c0_i32_0 = arith.constant 0 : i32
    %c0_i32_1 = arith.constant 0 : i32
    return %2, %c0_i32_0 : i32, i32
  }
  func.func @transform_1(%arg0: i32, %arg1: i32) -> (i32, i32) {
    %c1_i32 = arith.constant 1 : i32
    %0 = arith.muli %arg0, %c1_i32 : i32
    %1 = arith.addi %0, %arg1 : i32
    %c0_i32 = arith.constant 0 : i32
    %2 = arith.minsi %1, %c0_i32 : i32
    %c0_i32_0 = arith.constant 0 : i32
    %c0_i32_1 = arith.constant 0 : i32
    return %2, %c0_i32_0 : i32, i32
  }
  func.func @transform_2(%arg0: i32, %arg1: i32) -> (i32, i32, i32) {
    %c0_i32 = arith.constant 0 : i32
    %c0_i32_0 = arith.constant 0 : i32
    %c0_i32_1 = arith.constant 0 : i32
    return %arg0, %c0_i32, %c0_i32_0 : i32, i32, i32
  }
}

</mosaic_0001>

<bundles_post_ra>
// kernel: tpu_custom_call.1
= control target key start
LH: loop header
LB: loop body
LE: loop exit
PB: predicated region body
PF: predicated region fallthrough
CT: control target
= control target key end

     0   :  { %7 = vsyncpa [#allocation3], 0  ;;  %s641_s0 = inlined_call_operand.vmem [shape: f32[8,32], index: 0, kind: input, shape index: {}]   ;;  %s642_s1 = inlined_call_operand.vmem [shape: s32[8,1], index: 1, kind: input, shape index: {}]   ;;  %s643_s2 = inlined_call_operand.hbm [shape: f32[2,8,128], index: 2, kind: output, shape index: {}]  }
   0x1   :  { %9 = vsyncpa [#allocation3 + $0x1], 0  ;;  %s535_s9 = smov 0   ;;  %s537_s10 = smov 0  }
   0x2   :  { %s539_s11 = smov 0   ;;  %s541_s12 = smov 0  }
   0x3   :  { %s543_s13 = smov 0   ;;  %s545_s14 = smov 0  }
   0x4 LB: > { %s357_s15 = sadd.s32 4294967295, %s516_s14   ;;  %s358_s16 = sadd.s32 4294967294, %s516_s14   ;;  %s516_s14 = sphi %s545_s14, %s15_s14   ;;  %s512_s13 = sphi %s543_s13, %s650_s13   ;;  %s508_s12 = sphi %s541_s12, %s649_s12   ;;  %s504_s11 = sphi %s539_s11, %s648_s11   ;;  %s500_s10 = sphi %s537_s10, %s647_s10   ;;  %s496_s9 = sphi %s535_s9, %s646_s9  }
   0x5   : > { %s27_s17 = sadd.s32 1, %s512_s13  ;;  %s98_s18 = sadd.s32 1, %s504_s11 }
   0x6   : > { %p29_p0 = scmp.ge.s32.totalorder %s27_s17, 2  ;;  %p108_p1 = scmp.ne.s32.totalorder %s504_s11, %s500_s10 }
   0x7   : > { %p109_p2 = scmp.eq.s32.totalorder %s357_s15, 1  ;;  %p114_p3 = scmp.ne.s32.totalorder %s500_s10, %s496_s9 }
   0x8   : > { %s652_s17 = smov (%p29_p0, %s27_s17), 0  ;;  %p115_p5 = scmp.eq.s32.totalorder %s358_s16, 1 }
   0x9   : > { %p575_p4 = por %p109_p2, %p108_p1  ;;  %s95_s20 = ssub.s32 %s512_s13, %s652_s17 }
   0xa   : > { %p361_p6 = scmp.ge.s32.totalorder %s516_s14, 1  ;;  %p96_p7 = scmp.eq.s32.totalorder %s95_s20, 0 }
   0xb   : > { %p582_p8 = por %p115_p5, %p114_p3  ;;  %p159_p9 = scmp.lt.s32.totalorder %s516_s14, 3 }
   0xc   : > { %s588_s22 = scalar_select %p96_p7, %s504_s11, %s98_s18  }
   0xd   : > { %p160_p10 = pnand %p361_p6, %p159_p9 }
   0xe   : > { %p191_p11 = scmp.lt.s32.totalorder (!%p160_p10), %s508_s12, 0  ;;  %s371_s3 = sshll.u32 (!%p160_p10), %s508_s12, 3 }
   0xf   : > { %163 = sbr.rel (%p160_p10) target bundleno = 558 (0x22e), region = 28  ;;  %s187_s4 = sand.u32 (!%p160_p10), 1, %s500_s10  }
  0x10   : > { %s362_s5 = sshll.u32 (!%p160_p10), %s187_s4, 3  ;;  %s373_s6 = sshll.u32 (!%p160_p10), %s508_s12, 7 }
  0x11   : > { %s189_s7 = scalar_lea.vmem (!%p160_p10), [#allocation2], %s362_s5  ;;  %s276_s20 = scalar_lea.hbm (!%p160_p10), %s643_s2, %s373_s6 }
  0x12   : > { %s278_s8 = sshll.u32 (!%p160_p10), %s189_s7, 4  ;;  %s519_s25 = smov (!%p160_p10), [#allocation2]   ;;  %s279_s8 = int_to_ptr.vmem [resolvable:$true] %s278_s8 }
  0x13   : > { %s444_s26 = sshll.u32 (!%p160_p10), %s519_s25, 4  ;;  %s445_s26 = int_to_ptr.vmem [resolvable:$false] %s444_s26 }
  0x14   : > { %v518_v0 = vmov 0   ;;  %s192_s23 = scalar_select %p191_p11, %s508_s12, 0  ;;  %vm217_vm0 = vcmask 261120   ;;  %v230_v7 = vlaneseq  ;;  %v245_v16 = vstv %s371_s3 }
  0x15   : > { %435 = vset.pattern.permute.xlu0 %v518_v0  ;;  %vm250_vm3 = vcmask 7168   ;;  %s446_s12 = scalar_lea.vmem %s445_s26, 256  ;;  %p447_p1 = scmp.lt.s32.totalorder %s279_s8, %s445_s26 }
  0x16   : > { %s654_s23 = smov (!%p191_p11, %s192_s23), 0  ;;  %v231_v8 = vand.u32 127, %v230_v7  ;;  %v243_v15 = vshrl.u32 %v230_v7, 7 }
  0x17   : > { %s366_s24 = sshll.u32 %s654_s23, 3  ;;  %s265_s23 = scalar_lea.sflag [#allocation3], %s187_s4 }
  0x18   : > { %s196_s27 = scalar_lea.vmem %s641_s0, %s366_s24  ;;  %s206_s30 = scalar_lea.vmem %s642_s1, %s366_s24  ;;  %v246_v18 = vadd.s32 %v245_v16, %v243_v15 }
  0x19   : > { %v215_v1 = vld [vmem:[%s196_s27] sm:$0xff]  ;;  %s440_s24 = scalar_lea.vmem %s279_s8, 128 }
  0x1a   : > { %v218_v2 = vsel %vm217_vm0, %v215_v1, -inf  ;;  %v216_v3 = vld [vmem:[%s206_s30] sm:$0xff]  ;;  %vm247_vm2 = vcmp.lt.s32.totalorder %v246_v18, 8  ;;  %p441_p12 = scmp.ne.s32.totalorder %s279_s8, %s440_s24  ;;  %p448_p2 = scmp.lt.s32.totalorder %s446_s12, %s440_s24 }
  0x1b   : > { %219 = vmax.xlane.f32.xlu0 %v218_v2 }
  0x1c   : > { %p442_p13 = pnand %p441_p12, %p575_p4  ;;  %p449_p3 = por %p448_p2, %p447_p1 }
  0x1e   : > { %p443_p0 = pneg %p442_p13 }
  0x20   : > { %p450_p5 = pnand %p449_p3, %p443_p0 }
  0x31   : > { %233 = vperm.xlu0 %435, %v216_v3  }
  0xa4   : > { %v220_v4 = vpop.xlane.xlu0 %219 }
  0xa5   : > { %v221_v5 = vsub.f32 %v215_v1, %v220_v4 }
  0xa7   : > { %v222_v6 = vmul.f32 1.442695, %v221_v5 }
  0xa9   : > { %436 = vpow2.f32 %v222_v6 }
  0xac   : > { %v234_v9 = vpop.permute.xlu0 %233 }
  0xad   : > { %vm235_vm1 = vcmp.eq.s32.totalorder %v231_v8, %v234_v9 }
  0xae   : > { %v236_v11 = vsel %vm235_vm1, %v215_v1, 0.0 }
  0xaf   : > { %v237_v13 = vsel %vm217_vm0, %v236_v11, 0.0 }
  0xb6   : > { %v437_v10 = vpop.eup %436 }
  0xb7   : > { %v224_v12 = vsel %vm217_vm0, %v437_v10, 0.0 }
  0xb8   : > { %225 = vadd.xlane.f32.xlu1 %v224_v12 }
  0xbc   : > { %238 = vadd.xlane.f32.xlu1 %v237_v13 }
 0x141   : > { %v226_v14 = vpop.xlane.xlu1 %225 }
 0x142   : > { %438 = vlog2.f32 %v226_v14 }
 0x145   : > { %v239_v20 = vpop.xlane.xlu1 %238 }
 0x14f   : > { %v439_v17 = vpop.eup %438 }
 0x150   : > { %v228_v19 = vmul.f32 0.6931472, %v439_v17 }
 0x152   : > { %v229_v21 = vadd.f32 %v228_v19, %v220_v4 }
 0x154   : > { %v240_v22 = vsub.f32 %v229_v21, %v239_v20 }
 0x156   : > { %v248_v23 = vsel %vm247_vm2, %v240_v22, 0.0 }
 0x157   : > { %v251_v24 = vsel %vm250_vm3, %v248_v23, 0.0 }
 0x158   : > { %252 = vadd.xlane.f32.xlu1 %v251_v24 }
 0x1e1   : > { %v253_v25 = vpop.xlane.xlu1 %252 }
 0x1e2   : > { %v254_v26 = vrot.slane %v253_v25, 4 }
 0x1e4   : > { %v255_v27 = vadd.f32 %v254_v26, %v253_v25 }
 0x1e6   : > { %v256_v28 = vrot.slane %v255_v27, 2 }
 0x1e8   : > { %v257_v29 = vadd.f32 %v256_v28, %v255_v27 }
 0x1ea   : > { %v258_v30 = vrot.slane %v257_v29, 1 }
 0x1ec   : > { %v259_v31 = vadd.f32 %v258_v30, %v257_v29 }
 0x1ee   : > { %376 = vpush %v259_v31 }
 0x21f   : > { %s377_s15 = spop %376 }
 0x220   : > { %v261_v32 = vstv %s377_s15 }
 0x221   : > { %263 = vst [vmem:[%s189_s7] sm:$0xff] %v261_v32 }
 0x222   : > { %453 = shalt.err (!%p450_p5)
}
 0x223   : > { %s454_s27 = scalar_lea.hbm %s276_s20, 128  ;;  %s458_s30 = scalar_lea.hbm %s643_s2, 256 }
 0x224   : > { %p455_p6 = scmp.ne.s32.totalorder %s276_s20, %s454_s27  ;;  %p459_p10 = scmp.lt.s32.totalorder %s276_s20, %s643_s2 }
 0x225   : > { %p460_p11 = scmp.lt.s32.totalorder %s458_s30, %s454_s27 }
 0x226   : > { %p456_p7 = pnand %p455_p6, %p575_p4 }
 0x227   : > { %p461_p12 = por %p460_p11, %p459_p10 }
 0x228   : > { %p457_p9 = pneg %p456_p7 }
 0x22a   : > { %p462_p13 = pnand %p461_p12, %p457_p9 }
 0x22c   : > { %465 = shalt.err (!%p462_p13)
}
 0x22d   : > { %378 = dma.vmem_to_hbm [thread:$0]  (%p575_p4), %s279_s8, 128, %s276_s20, %s265_s23  }
 0x22e PF: > { %p384_p0 = scmp.ge.s32.totalorder %s516_s14, 2  ;;  %s290_s5 = sand.u32 1, %s496_s9  }
 0x22f   : > { %s291_s6 = scalar_lea.sflag [#allocation3], %s290_s5 }
 0x230   : > { %p381_p1 = pnand %p384_p0, %p582_p8 }
 0x232   : > { %p382_p2 = pneg %p381_p1 }
 0x234   : > { %491 = dma.done.wait (%p382_p2), %s291_s6, 128  }
 0x235   : > { %493 = vsyncadd (%p382_p2), %s291_s6, 4294967168  ;;  %s15_s14 = sadd.s32 1, %s516_s14   ;;  %s646_s9 = smov %s500_s10 }
 0x236   : > { %p12_p3 = scmp.ge.s32.totalorder %s15_s14, 4   ;;  %s647_s10 = smov %s504_s11 }
 0x237   : > { %s648_s11 = smov %s588_s22  ;;  %s649_s12 = smov %s512_s13 }
 0x238   : > { %s650_s13 = smov %s652_s17  ;;  %14 = sbr.rel (!%p12_p3) target bundleno = 4 (0x4), region = 70 }
 0x23d   :  { %296 = vsyncpa [#allocation3], 1 }
 0x23e   :  { %298 = vsyncpa [#allocation3 + $0x1], 1 }

</bundles_post_ra>
